<compile_context>
chip_gen: v7x
topology: tpu7x:2x2x1
jax: 0.10.0
libtpu: 0.0.40
codegen_flags: <defaults>
</compile_context>

<pallas_src>
import functools

import jax
import jax.numpy as jnp
from jax.experimental import pallas as pl
from jax.experimental.pallas import tpu as pltpu

_EPS = 1e-5
_LANE = 128


def _round_up(v, m):
    return (v + m - 1) // m * m


# --------------------------------------------------------------------------
# Kernel: one row tile (nb batch elements x L sequence positions).
#   phase 0: conv1                         -> partial sum / sum-sq (BN1 stats)
#   phase 1: conv1 + BN1 + ReLU + up/conv2 -> partial sum / sum-sq (BN2 stats)
#   phase 2: full forward                  -> lane-packed (even|odd) output
# --------------------------------------------------------------------------
def _rb_phase_kernel(x_ref, w1x_ref, w2f_ref, prm_ref, stat_ref, out_ref,
                     *, phase, nb, L, cpad):
    f32 = jnp.float32
    rows = nb * L

    # conv zero-padding masks built in-kernel from an iota (no mask DMA).
    l_idx = jax.lax.broadcasted_iota(jnp.int32, (rows, 1), 0) % L
    not_first = l_idx > 0            # position l == 0 has no left neighbor
    not_last = l_idx < (L - 1)       # position l == L-1 has no right neighbor

    def mm(a, b):                    # bf16 MXU operands, f32 accumulation
        return jnp.dot(a, b, preferred_element_type=f32)

    def shift_down(v):               # out[l] = v[l-1], zero at l == 0
        return jnp.where(not_first, pltpu.roll(v, 1, 0), jnp.zeros_like(v))

    def shift_up(v):                 # out[l] = v[l+1], zero at l == L-1
        return jnp.where(not_last, pltpu.roll(v, rows - 1, 0),
                         jnp.zeros_like(v))

    x = x_ref[...]                                    # (rows, cin_pad) bf16

    # ---- conv1 (+ fused shortcut conv_x in phase 2): per-tap matmuls; the
    # sequence shift is applied to the f32 matmul *outputs* (XLU roll + mask),
    # so the packed bf16 input never needs a sublane shift.
    ncol = 2 * cpad if phase == 2 else cpad
    p0 = mm(x, w1x_ref[0, :, :ncol])                  # tap k=0 (uses x[l-1])
    p1 = mm(x, w1x_ref[1, :, :ncol])                  # tap k=1 (uses x[l])
    p2 = mm(x, w1x_ref[2, :, :ncol])                  # tap k=2 (uses x[l+1])
    c1x = shift_down(p0) + p1 + shift_up(p2)          # (rows, ncol) f32

    b1 = prm_ref[0:1, :]
    c1 = c1x[:, :cpad] + b1                           # conv1 pre-BN, f32

    if phase == 0:
        out_ref[0, 0:1, :] = jnp.sum(c1, axis=0, keepdims=True)
        out_ref[0, 1:2, :] = jnp.sum(c1 * c1, axis=0, keepdims=True)
        return

    # ---- BN1 (global batch scale/shift precomputed in stat_ref) + ReLU ----
    inv1 = stat_ref[0:1, :]
    sh1 = stat_ref[1:2, :]
    y1 = jnp.maximum(c1 * inv1 + sh1, 0.0)            # f32
    y1b = y1.astype(jnp.bfloat16)                     # MXU operand only

    # ---- Upsample(x2, nearest) + conv2 fused, per output phase:
    #   even[l] = y[l-1] @ W0       + y[l] @ (W1 + W2)
    #   odd [l] = y[l]   @ (W0 + W1) + y[l+1] @ W2
    b2 = prm_ref[2:3, :]
    q0 = mm(y1b, w2f_ref[0])                          # y @ W0
    q1 = mm(y1b, w2f_ref[1])                          # y @ (W1 + W2)
    q2 = mm(y1b, w2f_ref[2])                          # y @ (W0 + W1)
    q3 = mm(y1b, w2f_ref[3])                          # y @ W2
    c2e = shift_down(q0) + q1 + b2                    # even phase, f32
    c2o = q2 + shift_up(q3) + b2                      # odd phase, f32

    if phase == 1:
        out_ref[0, 0:1, :] = (jnp.sum(c2e, axis=0, keepdims=True) +
                              jnp.sum(c2o, axis=0, keepdims=True))
        out_ref[0, 1:2, :] = (jnp.sum(c2e * c2e, axis=0, keepdims=True) +
                              jnp.sum(c2o * c2o, axis=0, keepdims=True))
        return

    # ---- phase 2: BN2 + ReLU + upsampled shortcut, lane-dense packed store -
    inv2 = stat_ref[2:3, :]
    sh2 = stat_ref[3:4, :]
    bx = prm_ref[1:2, :]
    cx = c1x[:, cpad:] + bx                           # shortcut conv_x
    out_ref[:, :cpad] = jnp.maximum(c2e * inv2 + sh2, 0.0) + cx
    out_ref[:, cpad:] = jnp.maximum(c2o * inv2 + sh2, 0.0) + cx


# --------------------------------------------------------------------------
# Wrapper
# --------------------------------------------------------------------------
def _taps_to_mats(w, cin_p, cout_p):
    """PyTorch Conv1d weight (O, I, K) -> per-tap matmul mats (K, cin_p, cout_p)."""
    o, i, _ = w.shape
    wt = jnp.transpose(w, (2, 1, 0)).astype(jnp.float32)       # (K, I, O)
    return jnp.pad(wt, ((0, 0), (0, cin_p - i), (0, cout_p - o)))


def _pad_vec(v, cpad):
    v = v.reshape(-1).astype(jnp.float32)
    return jnp.pad(v, (0, cpad - v.shape[0]))


def _bn_scale_shift(sums, count, gamma, beta):
    """Fold training-mode BatchNorm1d into a per-channel scale/shift."""
    mean = sums[0] / count
    # one-pass E[x^2]-E[x]^2 can cancel slightly negative -> clamp before rsqrt
    var = jnp.maximum(sums[1] / count - mean * mean, 0.0)
    inv = gamma * jax.lax.rsqrt(var + _EPS)
    return inv, beta - mean * inv


def residual_block_upsample(x_ncl, params, batches_per_tile=None):
    """ResidualBlock(sampling='upsample') forward.
    x: (N, in_ch, L) f32 -> (N, out_ch, 2L) f32 (PyTorch NCL layout)."""
    N, Cin, L = x_ncl.shape
    Cout = params["w1"].shape[0]

    cin_p = _round_up(Cin, _LANE)     # lane-aligned matmul K dim
    cpad = _round_up(Cout, _LANE)     # 2*cpad lane-dense output (>=128, %128==0)
    # TODO(synk): round channel pads to 256 on v6e/v7x (2x256x256 MXU) at
    # production channel counts.

    if batches_per_tile is None:
        batches_per_tile = max(1, min(N, 512 // max(L, 1)))
        while N % batches_per_tile:
            batches_per_tile -= 1
    nb = batches_per_tile
    assert N % nb == 0, "batches_per_tile must divide N"
    rows = nb * L
    assert rows % 8 == 0, "rows per tile must be sublane (8) aligned"
    # TODO(synk): if a single sequence (L) is too large for one tile, split L
    # with a one-row halo exchange instead of tiling only over batch.
    T = N // nb

    # inputs: bf16 pre-cast in the wrapper, channel-padded, no im2col.
    x2d = jnp.transpose(x_ncl, (0, 2, 1)).reshape(N * L, Cin)
    x2d = jnp.pad(x2d, ((0, 0), (0, cin_p - Cin))).astype(jnp.bfloat16)

    # conv1 + shortcut conv_x share input taps -> one (3, cin_p, 2*cpad) weight.
    w1m = _taps_to_mats(params["w1"], cin_p, cpad)
    wxm = _taps_to_mats(params["wx"], cin_p, cpad)
    w1x = jnp.concatenate([w1m, wxm], axis=-1).astype(jnp.bfloat16)

    # Upsample(x2)+conv2 folded into 4 matrices: [W0, W1+W2, W0+W1, W2].
    w2m = _taps_to_mats(params["w2"], cpad, cpad)
    W0, W1, W2 = w2m[0], w2m[1], w2m[2]
    w2f = jnp.stack([W0, W1 + W2, W0 + W1, W2], axis=0).astype(jnp.bfloat16)

    # per-channel bias vectors packed into one (8, cpad) f32 input (one DMA).
    prm = jnp.zeros((8, cpad), jnp.float32)
    prm = prm.at[0].set(_pad_vec(params["b1"], cpad))
    prm = prm.at[1].set(_pad_vec(params["bx"], cpad))
    prm = prm.at[2].set(_pad_vec(params["b2"], cpad))

    x_spec = pl.BlockSpec((rows, cin_p), lambda t: (t, 0))
    w1x_spec = pl.BlockSpec(w1x.shape, lambda t: (0, 0, 0))
    w2f_spec = pl.BlockSpec(w2f.shape, lambda t: (0, 0, 0))
    vec_spec = pl.BlockSpec((8, cpad), lambda t: (0, 0))
    in_specs = [x_spec, w1x_spec, w2f_spec, vec_spec, vec_spec]
    cparams = pltpu.CompilerParams(
        dimension_semantics=("parallel",),        # tiles are independent
        vmem_limit_bytes=48 * 1024 * 1024,        # under v7x's 64 MiB ceiling
    )
    pstat_shape = jax.ShapeDtypeStruct((T, 2, cpad), jnp.float32)
    pstat_spec = pl.BlockSpec((1, 2, cpad), lambda t: (t, 0, 0))

    def run(phase, stat, out_shape, out_spec):
        kern = functools.partial(_rb_phase_kernel, phase=phase,
                                 nb=nb, L=L, cpad=cpad)
        return pl.pallas_call(
            kern,
            out_shape=out_shape,
            grid=(T,),
            in_specs=in_specs,
            out_specs=out_spec,
            compiler_params=cparams,
        )(x2d, w1x, w2f, prm, stat)

    stat0 = jnp.zeros((8, cpad), jnp.float32)

    # pass 1: BN1 batch statistics (partial per tile; tiny XLA combine below).
    ps1 = run(0, stat0, pstat_shape, pstat_spec)
    inv1, sh1 = _bn_scale_shift(ps1.sum(axis=0), float(N * L),
                                _pad_vec(params["g1"], cpad),
                                _pad_vec(params["be1"], cpad))
    stat1 = stat0.at[0].set(inv1).at[1].set(sh1)

    # pass 2: BN2 batch statistics (over both upsample phases: N * 2L samples).
    ps2 = run(1, stat1, pstat_shape, pstat_spec)
    inv2, sh2 = _bn_scale_shift(ps2.sum(axis=0), float(N * 2 * L),
                                _pad_vec(params["g2"], cpad),
                                _pad_vec(params["be2"], cpad))
    stat2 = stat1.at[2].set(inv2).at[3].set(sh2)

    # pass 3: full forward, lane-packed (even|odd) output tiles.
    out2d = run(2, stat2,
                jax.ShapeDtypeStruct((N * L, 2 * cpad), jnp.float32),
                pl.BlockSpec((rows, 2 * cpad), lambda t: (t, 0)))

    # glue: unpack phases, drop channel padding, back to PyTorch NCL layout.
    out = out2d.reshape(N, L, 2, cpad)[:, :, :, :Cout].reshape(N, 2 * L, Cout)
    return jnp.transpose(out, (0, 2, 1))


# --------------------- pure-JAX reference (for checking) ---------------------
_PREC = jax.lax.Precision.HIGHEST


def _conv1d(x, w, b):
    y = jax.lax.conv_general_dilated(
        x, w, window_strides=(1,), padding=((1, 1),),
        dimension_numbers=("NCH", "OIH", "NCH"), precision=_PREC)
    return y + b[None, :, None]


def _bn_train(x, g, b):
    m = jnp.mean(x, axis=(0, 2), keepdims=True)
    v = jnp.mean((x - m) ** 2, axis=(0, 2), keepdims=True)
    return (x - m) * jax.lax.rsqrt(v + _EPS) * g[None, :, None] + b[None, :, None]


def _up2(x):
    return jnp.repeat(x, 2, axis=-1)


def reference(x, p):
    o1 = _up2(jax.nn.relu(_bn_train(_conv1d(x, p["w1"], p["b1"]), p["g1"], p["be1"])))
    o2 = jax.nn.relu(_bn_train(_conv1d(o1, p["w2"], p["b2"]), p["g2"], p["be2"]))
    ix = _up2(_conv1d(x, p["wx"], p["bx"]))
    return o2 + ix


if __name__ == "__main__":
    N, Cin, Cout, L, K = 2, 4, 8, 16, 3
    key = jax.random.PRNGKey(0)
    ks = jax.random.split(key, 8)

    x = jax.random.normal(ks[0], (N, Cin, L), jnp.float32)
    params = dict(
        w1=jax.random.normal(ks[1], (Cout, Cin, K), jnp.float32) * 0.3,
        b1=jax.random.normal(ks[2], (Cout,), jnp.float32) * 0.1,
        g1=jnp.ones((Cout,), jnp.float32),
        be1=jnp.zeros((Cout,), jnp.float32),
        w2=jax.random.normal(ks[3], (Cout, Cout, K), jnp.float32) * 0.3,
        b2=jax.random.normal(ks[4], (Cout,), jnp.float32) * 0.1,
        g2=jnp.ones((Cout,), jnp.float32),
        be2=jnp.zeros((Cout,), jnp.float32),
        wx=jax.random.normal(ks[5], (Cout, Cin, K), jnp.float32) * 0.3,
        bx=jax.random.normal(ks[6], (Cout,), jnp.float32) * 0.1,
    )

    # batches_per_tile=1 -> 2 tiles, exercising the pipelined/tiled path.
    out = residual_block_upsample(x, params, batches_per_tile=1)
    out = jax.block_until_ready(out)

    ref = reference(x, params)
    assert out.shape == (N, Cout, 2 * L), out.shape
    err = float(jnp.max(jnp.abs(out - ref)))
    # bf16 MXU operands vs a HIGHEST-precision f32 reference -> loose tolerance.
    assert jnp.allclose(out, ref, rtol=4e-2, atol=4e-2), err
    print("KERNEL_OK")
</pallas_src>

<mosaic_0001>
module attributes {stable_mosaic.version = 11 : i64} {
  func.func @_rb_phase_kernel(%arg0: i32, %arg1: memref<16x128xbf16, #tpu.memory_space<vmem>>, %arg2: memref<3x128x256xbf16, #tpu.memory_space<vmem>>, %arg3: memref<4x128x128xbf16, #tpu.memory_space<vmem>>, %arg4: memref<8x128xf32, #tpu.memory_space<vmem>>, %arg5: memref<8x128xf32, #tpu.memory_space<vmem>>, %arg6: memref<1x2x128xf32, #tpu.memory_space<vmem>>) attributes {dimension_semantics = [#tpu.dimension_semantics<parallel>], iteration_bounds = array<i64: 2>, scalar_prefetch = 0 : i64, scratch_operands = 0 : i64, tpu.core_type = #tpu.core_type<tc>, window_params = [{transform_indices = @transform_0, window_bounds = array<i64: 16, 128>}, {pipeline_mode = #tpu.pipeline_mode<synchronous>, transform_indices = @transform_1, window_bounds = array<i64: 3, 128, 256>}, {pipeline_mode = #tpu.pipeline_mode<synchronous>, transform_indices = @transform_2, window_bounds = array<i64: 4, 128, 128>}, {pipeline_mode = #tpu.pipeline_mode<synchronous>, transform_indices = @transform_3, window_bounds = array<i64: 8, 128>}, {pipeline_mode = #tpu.pipeline_mode<synchronous>, transform_indices = @transform_4, window_bounds = array<i64: 8, 128>}, {transform_indices = @transform_5, window_bounds = array<i64: 1, 2, 128>}]} {
    %0 = tpu.iota {dimensions = array<i32: 0>} : vector<16x1xi32>
    %c16_i32 = arith.constant 16 : i32
    %c0_i32 = arith.constant 0 : i32
    %1 = arith.cmpi eq, %c16_i32, %c0_i32 : i32
    %c1_i32 = arith.constant 1 : i32
    %2 = arith.select %1, %c1_i32, %c16_i32 : i32
    %3 = vector.broadcast %2 : i32 to vector<16x1xi32>
    %4 = arith.remsi %0, %3 : vector<16x1xi32>
    %c0_i32_0 = arith.constant 0 : i32
    %5 = vector.broadcast %c0_i32_0 : i32 to vector<16x1xi32>
    %6 = arith.cmpi ne, %4, %5 : vector<16x1xi32>
    %c0_i32_1 = arith.constant 0 : i32
    %7 = vector.broadcast %c0_i32_1 : i32 to vector<16x1xi32>
    %8 = arith.cmpi slt, %4, %7 : vector<16x1xi32>
    %c0_i32_2 = arith.constant 0 : i32
    %9 = arith.cmpi slt, %2, %c0_i32_2 : i32
    %10 = vector.broadcast %9 : i1 to vector<16x1xi1>
    %11 = vector.broadcast %10 : vector<16x1xi1> to vector<16x1xi1>
    %12 = arith.xori %8, %11 : vector<16x1xi1>
    %13 = arith.andi %12, %6 : vector<16x1xi1>
    %14 = vector.broadcast %2 : i32 to vector<16x1xi32>
    %15 = arith.addi %4, %14 : vector<16x1xi32>
    %16 = arith.select %13, %15, %4 : vector<16x1xi1>, vector<16x1xi32>
    %c0_i32_3 = arith.constant 0 : i32
    %17 = vector.broadcast %c0_i32_3 : i32 to vector<16x1xi32>
    %18 = arith.cmpi sgt, %16, %17 : vector<16x1xi32>
    %c15_i32 = arith.constant 15 : i32
    %19 = vector.broadcast %c15_i32 : i32 to vector<16x1xi32>
    %20 = arith.cmpi slt, %16, %19 : vector<16x1xi32>
    %c0 = arith.constant 0 : index
    %c0_4 = arith.constant 0 : index
    %21 = vector.load %arg1[%c0, %c0_4] : memref<16x128xbf16, #tpu.memory_space<vmem>>, vector<16x128xbf16>
    %c0_5 = arith.constant 0 : index
    %c0_6 = arith.constant 0 : index
    %c0_7 = arith.constant 0 : index
    %22 = vector.load %arg2[%c0_5, %c0_6, %c0_7] : memref<3x128x256xbf16, #tpu.memory_space<vmem>>, vector<1x128x128xbf16>
    %23 = vector.shape_cast %22 : vector<1x128x128xbf16> to vector<128x128xbf16>
    %cst = arith.constant dense<0.000000e+00> : vector<16x128xf32>
    %24 = tpu.matmul %21, %23, %cst {dimension_numbers = #tpu.dot_dimension_numbers<[1], [0], [0], [1], [0, 0, 1, 1], [], []>} : vector<16x128xbf16>, vector<128x128xbf16>, vector<16x128xf32> -> vector<16x128xf32>
    %c1 = arith.constant 1 : index
    %c0_8 = arith.constant 0 : index
    %c0_9 = arith.constant 0 : index
    %25 = vector.load %arg2[%c1, %c0_8, %c0_9] : memref<3x128x256xbf16, #tpu.memory_space<vmem>>, vector<1x128x128xbf16>
    %26 = vector.shape_cast %25 : vector<1x128x128xbf16> to vector<128x128xbf16>
    %cst_10 = arith.constant dense<0.000000e+00> : vector<16x128xf32>
    %27 = tpu.matmul %21, %26, %cst_10 {dimension_numbers = #tpu.dot_dimension_numbers<[1], [0], [0], [1], [0, 0, 1, 1], [], []>} : vector<16x128xbf16>, vector<128x128xbf16>, vector<16x128xf32> -> vector<16x128xf32>
    %c2 = arith.constant 2 : index
    %c0_11 = arith.constant 0 : index
    %c0_12 = arith.constant 0 : index
    %28 = vector.load %arg2[%c2, %c0_11, %c0_12] : memref<3x128x256xbf16, #tpu.memory_space<vmem>>, vector<1x128x128xbf16>
    %29 = vector.shape_cast %28 : vector<1x128x128xbf16> to vector<128x128xbf16>
    %cst_13 = arith.constant dense<0.000000e+00> : vector<16x128xf32>
    %30 = tpu.matmul %21, %29, %cst_13 {dimension_numbers = #tpu.dot_dimension_numbers<[1], [0], [0], [1], [0, 0, 1, 1], [], []>} : vector<16x128xbf16>, vector<128x128xbf16>, vector<16x128xf32> -> vector<16x128xf32>
    %c1_i32_14 = arith.constant 1 : i32
    %31 = tpu.dynamic_rotate %24 by %c1_i32_14 dim 0 : vector<16x128xf32>, i32 -> vector<16x128xf32>
    %cst_15 = arith.constant 0.000000e+00 : f32
    %32 = vector.broadcast %cst_15 : f32 to vector<16x128xf32>
    %33 = vector.shape_cast %18 : vector<16x1xi1> to vector<16x1xi1>
    %34 = vector.broadcast %33 : vector<16x1xi1> to vector<16x128xi1>
    %35 = arith.select %34, %31, %32 : vector<16x128xi1>, vector<16x128xf32>
    %36 = arith.addf %35, %27 : vector<16x128xf32>
    %c15_i32_16 = arith.constant 15 : i32
    %37 = tpu.dynamic_rotate %30 by %c15_i32_16 dim 0 : vector<16x128xf32>, i32 -> vector<16x128xf32>
    %cst_17 = arith.constant 0.000000e+00 : f32
    %38 = vector.broadcast %cst_17 : f32 to vector<16x128xf32>
    %39 = vector.shape_cast %20 : vector<16x1xi1> to vector<16x1xi1>
    %40 = vector.broadcast %39 : vector<16x1xi1> to vector<16x128xi1>
    %41 = arith.select %40, %37, %38 : vector<16x128xi1>, vector<16x128xf32>
    %42 = arith.addf %36, %41 : vector<16x128xf32>
    %c0_18 = arith.constant 0 : index
    %c0_19 = arith.constant 0 : index
    %43 = vector.load %arg4[%c0_18, %c0_19] : memref<8x128xf32, #tpu.memory_space<vmem>>, vector<1x128xf32>
    %44 = vector.broadcast %43 : vector<1x128xf32> to vector<16x128xf32>
    %45 = arith.addf %42, %44 : vector<16x128xf32>
    %cst_20 = arith.constant dense<0.000000e+00> : vector<128xf32>
    %46 = vector.multi_reduction <add>, %45, %cst_20 [0] : vector<16x128xf32> to vector<128xf32>
    %47 = vector.shape_cast %46 : vector<128xf32> to vector<1x128xf32>
    %c0_21 = arith.constant 0 : index
    %c0_22 = arith.constant 0 : index
    %c0_23 = arith.constant 0 : index
    %48 = vector.load %arg6[%c0_21, %c0_22, %c0_23] : memref<1x2x128xf32, #tpu.memory_space<vmem>>, vector<1x1x128xf32>
    %49 = vector.shape_cast %48 : vector<1x1x128xf32> to vector<1x128xf32>
    %50 = vector.shape_cast %47 : vector<1x128xf32> to vector<1x1x128xf32>
    tpu.vector_store %arg6[%c0_21, %c0_22, %c0_23], %50 {strides = array<i32>} : memref<1x2x128xf32, #tpu.memory_space<vmem>>, vector<1x1x128xf32>,
    %51 = arith.mulf %45, %45 : vector<16x128xf32>
    %cst_24 = arith.constant dense<0.000000e+00> : vector<128xf32>
    %52 = vector.multi_reduction <add>, %51, %cst_24 [0] : vector<16x128xf32> to vector<128xf32>
    %53 = vector.shape_cast %52 : vector<128xf32> to vector<1x128xf32>
    %c0_25 = arith.constant 0 : index
    %c1_26 = arith.constant 1 : index
    %c0_27 = arith.constant 0 : index
    %54 = vector.load %arg6[%c0_25, %c1_26, %c0_27] : memref<1x2x128xf32, #tpu.memory_space<vmem>>, vector<1x1x128xf32>
    %55 = vector.shape_cast %54 : vector<1x1x128xf32> to vector<1x128xf32>
    %56 = vector.shape_cast %53 : vector<1x128xf32> to vector<1x1x128xf32>
    tpu.vector_store %arg6[%c0_25, %c1_26, %c0_27], %56 {strides = array<i32>} : memref<1x2x128xf32, #tpu.memory_space<vmem>>, vector<1x1x128xf32>,
    return
  }
  func.func @transform_0(%arg0: i32) -> (i32, i32) {
    %c0_i32 = arith.constant 0 : i32
    %c0_i32_0 = arith.constant 0 : i32
    return %arg0, %c0_i32 : i32, i32
  }
  func.func @transform_1(%arg0: i32) -> (i32, i32, i32) {
    %c0_i32 = arith.constant 0 : i32
    %c0_i32_0 = arith.constant 0 : i32
    %c0_i32_1 = arith.constant 0 : i32
    %c0_i32_2 = arith.constant 0 : i32
    return %c0_i32, %c0_i32_0, %c0_i32_1 : i32, i32, i32
  }
  func.func @transform_2(%arg0: i32) -> (i32, i32, i32) {
    %c0_i32 = arith.constant 0 : i32
    %c0_i32_0 = arith.constant 0 : i32
    %c0_i32_1 = arith.constant 0 : i32
    %c0_i32_2 = arith.constant 0 : i32
    return %c0_i32, %c0_i32_0, %c0_i32_1 : i32, i32, i32
  }
  func.func @transform_3(%arg0: i32) -> (i32, i32) {
    %c0_i32 = arith.constant 0 : i32
    %c0_i32_0 = arith.constant 0 : i32
    %c0_i32_1 = arith.constant 0 : i32
    return %c0_i32, %c0_i32_0 : i32, i32
  }
  func.func @transform_4(%arg0: i32) -> (i32, i32) {
    %c0_i32 = arith.constant 0 : i32
    %c0_i32_0 = arith.constant 0 : i32
    %c0_i32_1 = arith.constant 0 : i32
    return %c0_i32, %c0_i32_0 : i32, i32
  }
  func.func @transform_5(%arg0: i32) -> (i32, i32, i32) {
    %c0_i32 = arith.constant 0 : i32
    %c0_i32_0 = arith.constant 0 : i32
    %c0_i32_1 = arith.constant 0 : i32
    return %arg0, %c0_i32, %c0_i32_0 : i32, i32, i32
  }
}

</mosaic_0001>

<bundles_post_ra>
// kernel: tpu_custom_call.1
= control target key start
LH: loop header
LB: loop body
LE: loop exit
PB: predicated region body
PF: predicated region fallthrough
CT: control target
= control target key end

     0   :  { %10 = vsyncpa [#allocation3], 0  ;;  %s1576_s0 = inlined_call_operand.hbm [shape: bf16[32,128], index: 0, kind: input, shape index: {}]   ;;  %s1577_s1 = inlined_call_operand.hbm [shape: bf16[3,128,256], index: 1, kind: input, shape index: {}]   ;;  %s1578_s2 = inlined_call_operand.hbm [shape: bf16[4,128,128], index: 2, kind: input, shape index: {}]   ;;  %s1579_s3 = inlined_call_operand.vmem [shape: f32[8,128], index: 3, kind: input, shape index: {}]   ;;  %s1580_s4 = inlined_call_operand.hbm [shape: f32[8,128], index: 4, kind: input, shape index: {}]   ;;  %s1581_s5 = inlined_call_operand.hbm [shape: f32[2,2,128], index: 5, kind: output, shape index: {}]  }
   0x1   :  { %12 = vsyncpa [#allocation3 + $0x1], 0 }
   0x2   :  { %13 = vsyncpa [#allocation6], 0 }
   0x3   :  { %14 = vsyncpa [#allocation9], 0 }
   0x4   :  { %15 = vsyncpa [#allocation4], 0 }
   0x5   :  { %17 = vsyncpa [#allocation4 + $0x1], 0  ;;  %s1279_s18 = smov 0   ;;  %s1281_s19 = smov 0  }
   0x6   :  { %s1283_s20 = smov 0   ;;  %s1285_s21 = smov 0  }
   0x7 LB: > { %s1300_s22 = sadd.s32 4294967295, %s1236_s21   ;;  %s807_s23 = sadd.s32 4294967294, %s1236_s21   ;;  %s1236_s21 = sphi %s1285_s21, %s1604_s21   ;;  %s1232_s20 = sphi %s1283_s20, %s1603_s20   ;;  %s1228_s19 = sphi %s1281_s19, %s1602_s19   ;;  %s1224_s18 = sphi %s1279_s18, %s1601_s18  }
   0x8   : > { %p43_p0 = scmp.ne.s32.totalorder %s1228_s19, %s1224_s18  ;;  %p1582_p1 = scmp.eq.s32.totalorder %s1300_s22, 0 }
   0x9   : > { %p157_p3 = scmp.eq.s32.totalorder %s807_s23, 1  ;;  %p808_p5 = scmp.ge.s32.totalorder %s1236_s21, 1 }
   0xa   : > { %p1309_p4 = por %p1582_p1, %p43_p0  ;;  %p164_p7 = scmp.lt.s32.totalorder %s1236_s21, 3 }
   0xb   : > { %p1314_p6 = por %p157_p3, %p43_p0  ;;  %s1238_s27 = smov [#allocation5]  }
   0xc   : > { %s1585_s24 = scalar_select %p1309_p4, 1, 0 }
   0xd   : > { %s1586_s25 = scalar_select %p1314_p6, 1, 0 }
   0xe   : > { %p1319_p8 = pnand %p808_p5, %p164_p7  ;;  %s176_s28 = sshll.u32 %s1238_s27, 4  ;;  %s1323_s28 = int_to_ptr.vmem [resolvable:$true] %s176_s28 }
   0xf   : > { %s1239_s30 = smov [#allocation7]   ;;  %s1048_s9 = scalar_lea.hbm %s1577_s1, 6144 }
  0x10   : > { %s1587_s26 = scalar_select %p1319_p8, 1, 0 }
  0x11   : > { %p956_p9 = pneg %p1319_p8  ;;  %s189_s6 = sshll.u32 %s1239_s30, 4  ;;  %s1334_s6 = int_to_ptr.vmem [resolvable:$true] %s189_s6 }
  0x12   : > { %p1049_p12 = scmp.ne.s32.totalorder %s1577_s1, %s1048_s9  ;;  %p1055_p5 = scmp.lt.u32.totalorder %s1048_s9, %s1577_s1 }
  0x13   : > { %p1330_p11 = pnand %p956_p9, %p1582_p1 }
  0x15   : > { %p1344_p13 = pneg %p1330_p11 }
  0x17   : > { %p1051_p0 = pnand %p1344_p13, %p1049_p12 }
  0x19   : > { %p1052_p3 = pneg %p1051_p0 }
  0x1b   : > { %p1057_p7 = pnand %p1055_p5, %p1052_p3 }
  0x1d   : > { %1060 = shalt.err (!%p1057_p7)
}
  0x1e   : > { %s1061_s15 = scalar_lea.vmem %s1323_s28, 6144  ;;  %p1069_p2 = scmp.lt.s32.totalorder %s1323_s28, %s1323_s28 }
  0x1f   : > { %p1062_p9 = scmp.ne.s32.totalorder %s1323_s28, %s1061_s15  ;;  %p1070_p6 = scmp.lt.s32.totalorder %s1061_s15, %s1061_s15 }
  0x21   : > { %p1064_p10 = pnand %p1062_p9, %p1344_p13  ;;  %p1071_p12 = por %p1070_p6, %p1069_p2 }
  0x23   : > { %p1065_p1 = pneg %p1064_p10 }
  0x25   : > { %p1072_p0 = pnand %p1071_p12, %p1065_p1 }
  0x27   : > { %1075 = shalt.err (!%p1072_p0)
}
  0x28   : > { %s1240_s16 = smov 128   ;;  %s1241_s17 = smov 8  }
  0x29   : > { %959 = dma.hbm_to_vmem [thread:$0]  (!%p1330_p11), %s1577_s1, 6144, %s1323_s28, [#allocation6], %s1240_s16, %s1240_s16, %s1241_s17  }
  0x2a   : > { %s1076_s8 = scalar_lea.hbm %s1578_s2, 4096 }
  0x2b   : > { %p1077_p2 = scmp.ne.s32.totalorder %s1578_s2, %s1076_s8  ;;  %p1083_p10 = scmp.lt.u32.totalorder %s1076_s8, %s1578_s2 }
  0x2d   : > { %p1079_p1 = pnand %p1077_p2, %p1344_p13 }
  0x2f   : > { %p1080_p6 = pneg %p1079_p1 }
  0x31   : > { %p1085_p3 = pnand %p1083_p10, %p1080_p6 }
  0x33   : > { %1088 = shalt.err (!%p1085_p3)
}
  0x34   : > { %s1089_s28 = scalar_lea.vmem %s1334_s6, 4096  ;;  %p1097_p12 = scmp.lt.s32.totalorder %s1334_s6, %s1334_s6 }
  0x35   : > { %p1090_p5 = scmp.ne.s32.totalorder %s1334_s6, %s1089_s28  ;;  %p1098_p0 = scmp.lt.s32.totalorder %s1089_s28, %s1089_s28 }
  0x37   : > { %p1092_p7 = pnand %p1090_p5, %p1344_p13  ;;  %p1099_p2 = por %p1098_p0, %p1097_p12 }
  0x39   : > { %p1093_p9 = pneg %p1092_p7 }
  0x3b   : > { %p1100_p1 = pnand %p1099_p2, %p1093_p9 }
  0x3d   : > { %1103 = shalt.err (!%p1100_p1)
}
  0x3e   : > { %s1242_s14 = smov 64   ;;  %s1243_s15 = smov 4  }
  0x3f   : > { %962 = dma.hbm_to_vmem [thread:$0]  (!%p1330_p11), %s1578_s2, 4096, %s1334_s6, [#allocation6], %s1242_s14, %s1242_s14, %s1243_s15  }
  0x40   : > { %s1244_s23 = smov [#allocation8]   ;;  %s1392_s30 = sadd.s32 1, %s1236_s21  }
  0x41   : > { %s206_s27 = sshll.u32 %s1244_s23, 4  ;;  %s1104_s9 = scalar_lea.hbm %s1580_s4, 128  ;;  %s207_s27 = int_to_ptr.vmem [resolvable:$true] %s206_s27 }
  0x42   : > { %p1105_p6 = scmp.ne.s32.totalorder %s1580_s4, %s1104_s9  ;;  %p1111_p5 = scmp.lt.u32.totalorder %s1104_s9, %s1580_s4 }
  0x44   : > { %p1107_p10 = pnand %p1105_p6, %p1344_p13 }
  0x46   : > { %p1108_p3 = pneg %p1107_p10 }
  0x48   : > { %p1113_p7 = pnand %p1111_p5, %p1108_p3 }
  0x4a   : > { %1116 = shalt.err (!%p1113_p7)
}
  0x4b   : > { %s1117_s6 = scalar_lea.vmem %s207_s27, 128  ;;  %p1125_p2 = scmp.lt.s32.totalorder %s207_s27, %s207_s27 }
  0x4c   : > { %p1118_p9 = scmp.ne.s32.totalorder %s207_s27, %s1117_s6  ;;  %p1126_p1 = scmp.lt.s32.totalorder %s1117_s6, %s1117_s6 }
  0x4e   : > { %p1120_p12 = pnand %p1118_p9, %p1344_p13  ;;  %p1127_p4 = por %p1126_p1, %p1125_p2 }
  0x50   : > { %p1121_p0 = pneg %p1120_p12 }
  0x52   : > { %p1128_p8 = pnand %p1127_p4, %p1121_p0 }
  0x54   : > { %1131 = shalt.err (!%p1128_p8)
}
  0x55   : > { %965 = dma.hbm_to_vmem [thread:$0]  (!%p1330_p11), %s1580_s4, 128, %s207_s27, [#allocation9]  }
  0x56   : > { %s27_s12 = ssub.s32 %s1236_s21, %s1392_s30  ;;  %s30_s23 = sadd.s32 1, %s1232_s20 }
  0x57   : > { %p28_p4 = scmp.eq.s32.totalorder %s27_s12, 0  ;;  %p37_p8 = scmp.ne.s32.totalorder %s1232_s20, %s1228_s19 }
  0x58   : > { %p38_p13 = scmp.eq.s32.totalorder %s1236_s21, 0  ;;  %p977_p6 = scmp.lt.s32.totalorder %s1236_s21, 2 }
  0x59   : > { %s1420_s29 = scalar_select %p28_p4, %s1232_s20, %s30_s23  }
  0x5a   : > { %p39_p10 = por %p38_p13, %p37_p8  ;;  %p1590_p3 = scmp.eq.s32.totalorder %s1300_s22, 1 }
  0x5b   : > { %s217_s8 = sand.u32 1, %s1232_s20   ;;  %s852_s9 = sshll.u32 %s1236_s21, 7 }
  0x5c   : > { %p1424_p5 = por %p1590_p3, %p37_p8  ;;  %s813_s10 = sshll.u32 %s217_s8, 3 }
  0x5d   : > { %s1433_s27 = scalar_lea.hbm %s1576_s0, %s852_s9  ;;  %s221_s28 = scalar_lea.vmem [#allocation2], %s813_s10 }
  0x5e   : > { %s228_s6 = sshll.u32 %s221_s28, 4  ;;  %p1435_p11 = pnand %p977_p6, %p39_p10  ;;  %s1439_s6 = int_to_ptr.vmem [resolvable:$true] %s228_s6 }
  0x5f   : > { %s1441_s17 = scalar_lea.sflag [#allocation3], %s217_s8  ;;  %s1132_s12 = scalar_lea.hbm %s1433_s27, 128 }
  0x60   : > { %p1133_p7 = scmp.ne.s32.totalorder %s1433_s27, %s1132_s12  ;;  %p1134_p9 = pneg %p1435_p11 }
  0x61   : > { %s1137_s10 = scalar_lea.hbm %s1576_s0, 256  ;;  %p1138_p2 = scmp.lt.u32.totalorder %s1433_s27, %s1576_s0 }
  0x62   : > { %p1135_p12 = pnand %p1134_p9, %p1133_p7  ;;  %p1139_p1 = scmp.lt.u32.totalorder %s1137_s10, %s1132_s12 }
  0x63   : > { %p1141_p8 = scmp.lt.u32.totalorder %s1132_s12, %s1433_s27 }
  0x64   : > { %p1136_p0 = pneg %p1135_p12  ;;  %p1140_p4 = por %p1139_p1, %p1138_p2 }
  0x66   : > { %p1142_p13 = por %p1141_p8, %p1140_p4 }
  0x68   : > { %p1143_p6 = pnand %p1142_p13, %p1136_p0 }
  0x6a   : > { %1146 = shalt.err (!%p1143_p6)
}
  0x6b   : > { %s1147_s8 = scalar_lea.vmem %s1439_s6, 128  ;;  %s1245_s28 = smov [#allocation2]  }
  0x6c   : > { %p1148_p10 = scmp.ne.s32.totalorder %s1439_s6, %s1147_s8  ;;  %s1152_s23 = sshll.u32 %s1245_s28, 4  ;;  %s1153_s23 = int_to_ptr.vmem [resolvable:$false] %s1152_s23 }
  0x6d   : > { %s1154_s9 = scalar_lea.vmem %s1153_s23, 256  ;;  %p1155_p12 = scmp.lt.s32.totalorder %s1439_s6, %s1153_s23 }
  0x6e   : > { %p1150_p3 = pnand %p1148_p10, %p1134_p9  ;;  %p1156_p2 = scmp.lt.s32.totalorder %s1154_s9, %s1147_s8 }
  0x70   : > { %p1151_p7 = pneg %p1150_p3  ;;  %p1157_p1 = por %p1156_p2, %p1155_p12 }
  0x72   : > { %p1158_p4 = pnand %p1157_p1, %p1151_p7 }
  0x74   : > { %1161 = shalt.err (!%p1158_p4)
}
  0x75   : > { %969 = dma.hbm_to_vmem [thread:$0]  (!%p1435_p11), %s1433_s27, 128, %s1439_s6, %s1441_s17, %s1242_s14, %s1242_s14, %s1243_s15  }
  0x76   : > { %p1593_p9 = scmp.ne.s32.totalorder %s1587_s26, 0 }
  0x77   : > { %s1475_s12 = sand.u32 (!%p1593_p9), 1, %s1228_s19   ;;  %p1594_p0 = scmp.ne.s32.totalorder (!%p1593_p9), %s1585_s24, 0 }
  0x78   : > { %240 = sbr.rel (%p1593_p9) target bundleno = 453 (0x1c5), region = 40  ;;  %s817_s10 = sshll.u32 (!%p1593_p9), %s1475_s12, 3 }
  0x79   : > { %s243_s11 = scalar_lea.sflag (!%p1593_p9), [#allocation3], %s1475_s12  ;;  %s1479_s13 = scalar_lea.vmem (!%p1593_p9), [#allocation2], %s817_s10 }
  0x7f   : > { %1207 = dma.done.wait (%p1594_p0), %s243_s11, 128  }
  0x80   : > { %1209 = vsyncadd (%p1594_p0), %s243_s11, 4294967168  ;;  %p1595_p11 = scmp.eq.s32.totalorder %s1300_s22, 0 }
  0x82   : > { %1211 = dma.done.wait (%p1595_p11), [#allocation6], 10240   ;;  %p1596_p8 = pmov %p1595_p11 }
  0x84   : > { %1213 = vsyncadd (%p1596_p8), [#allocation6], 4294957056  ;;  %p1597_p13 = pmov %p1596_p8 }
  0x85   : > { %p1598_p6 = pmov %p1596_p8 }
  0x86   : > { %1215 = dma.done.wait (%p1597_p13), [#allocation9], 128  }
  0x87   : > { %1217 = vsyncadd (%p1598_p6), [#allocation9], 4294967168  ;;  %v1246_v0 = vmov 0.0   ;;  %vm1247_vm0 = vmmov 0   ;;  %v1023_v1 = vld [vmem:[#allocation5] ss:$8 sps:$4 sm:$0xff]   ;;  %v287_v26 = vlaneseq }
  0x88   : > { %880 = vmatprep.subr.bf16.mxu0 %v1246_v0  ;;  %900 = vmatprep.subr.bf16.mxu1 %v1246_v0  ;;  %v1024_v2 = vld [vmem:[#allocation5 + $0x80] ss:$8 sps:$4 sm:$0xff]   ;;  %v1025_v3 = vld [vmem:[#allocation5 + $0x10] ss:$8 sps:$4 sm:$0xff]   ;;  %s821_s14 = sshll.u32 %s1475_s12, 1  ;;  %s849_s15 = sshll.u32 %s1300_s22, 5 }
  0x89   : > { %896 = vmatprep.mubr.msk.bf16.mxu0 %vm1247_vm0, %v1246_v0  ;;  %916 = vmatprep.mubr.msk.bf16.mxu1 %vm1247_vm0, %v1246_v0  ;;  %v1026_v4 = vld [vmem:[#allocation5 + $0x90] ss:$8 sps:$4 sm:$0xff]   ;;  %v1027_v5 = vld [vmem:[#allocation5 + $0x20] ss:$8 sps:$4 sm:$0xff]   ;;  %v288_v27 = vshrl.u32 %v287_v26, 7  ;;  %s284_s27 = scalar_lea.vmem [#allocation10], %s821_s14  ;;  %s1532_s8 = scalar_lea.hbm %s1581_s5, %s849_s15 }
  0x8a   : > { %881 = vmatpush3.bf16.msra.mxu0 %v1023_v1  ;;  %901 = vmatpush3.bf16.msra.mxu1 %v1024_v2  ;;  %v1028_v6 = vld [vmem:[#allocation5 + $0xa0] ss:$8 sps:$4 sm:$0xff]   ;;  %v1029_v7 = vld [vmem:[#allocation5 + $0x30] ss:$8 sps:$4 sm:$0xff]   ;;  %s708_s6 = sshll.u32 %s284_s27, 4  ;;  %s695_s28 = scalar_lea.sflag [#allocation4], %s1475_s12  ;;  %s1534_s6 = int_to_ptr.vmem [resolvable:$true] %s708_s6 }
  0x8b   : > { %882 = vmatprep.subr.bf16.mxu0 %v1246_v0  ;;  %902 = vmatprep.subr.bf16.mxu1 %v1246_v0  ;;  %v1030_v8 = vld [vmem:[#allocation5 + $0xb0] ss:$8 sps:$4 sm:$0xff]   ;;  %v1031_v9 = vld [vmem:[#allocation5 + $0x40] ss:$8 sps:$4 sm:$0xff]   ;;  %v294_v28 = vand.u32 15, %v288_v27  ;;  %vm645_vm1 = vcmp.lt.s32.totalorder %v288_v27, 1 }
  0x8c   : > { %v1032_v10 = vld [vmem:[#allocation5 + $0xc0] ss:$8 sps:$4 sm:$0xff]   ;;  %v1033_v11 = vld [vmem:[#allocation5 + $0x50] ss:$8 sps:$4 sm:$0xff]   ;;  %v289_v44 = vadd.s32 8, %v288_v27  ;;  %vm658_vm3 = vcmp.lt.s32.totalorder %v288_v27, 7 }
  0x8d   : > { %v1034_v12 = vld [vmem:[#allocation5 + $0xd0] ss:$8 sps:$4 sm:$0xff]   ;;  %v1035_v13 = vld [vmem:[#allocation5 + $0x60] ss:$8 sps:$4 sm:$0xff]   ;;  %vm314_vm2 = vcmp.gt.s32.totalorder %v294_v28, 0  ;;  %s1162_s23 = scalar_lea.vmem %s1534_s6, 32 }
  0x8e   : > { %883 = vmatpush3.bf16.msra.mxu0 %v1025_v3  ;;  %903 = vmatpush3.bf16.msra.mxu1 %v1026_v4  ;;  %v1036_v14 = vld [vmem:[#allocation5 + $0xe0] ss:$8 sps:$4 sm:$0xff]   ;;  %v1037_v15 = vld [vmem:[#allocation5 + $0x70] ss:$8 sps:$4 sm:$0xff]   ;;  %v301_v45 = vand.u32 15, %v289_v44  ;;  %p1163_p10 = scmp.ne.s32.totalorder %s1534_s6, %s1162_s23  ;;  %s1248_s22 = smov [#allocation10]  }
  0x8f   : > { %884 = vmatprep.subr.bf16.mxu0 %v1246_v0  ;;  %904 = vmatprep.subr.bf16.mxu1 %v1246_v0  ;;  %v1039_v16 = vld [vmem:[#allocation5 + $0xf0] ss:$8 sps:$4 sm:$0xff]   ;;  %v1040_v18 = vld [vmem:[#allocation5 + $0x100] ss:$8 sps:$4 sm:$0xff]   ;;  %s1166_s9 = sshll.u32 %s1248_s22, 4  ;;  %s1167_s9 = int_to_ptr.vmem [resolvable:$false] %s1166_s9 }
  0x90   : > { %v1038_v17 = vld [vmem:[%s1479_s13] sm:$0xff]   ;;  %v1042_v20 = vld [vmem:[#allocation5 + $0x120] ss:$8 sps:$4 sm:$0xff]   ;;  %vm317_vm4 = vcmp.lt.s32.totalorder %v301_v45, 15  ;;  %p1164_p3 = pnand %p1163_p10, %p1424_p5  ;;  %s1168_s10 = scalar_lea.vmem %s1167_s9, 64 }
  0x91   : > { %v1041_v19 = vld [vmem:[#allocation5 + $0x110] ss:$8 sps:$4 sm:$0xff]   ;;  %v1044_v22 = vld [vmem:[#allocation5 + $0x140] ss:$8 sps:$4 sm:$0xff]   ;;  %p1169_p12 = scmp.lt.s32.totalorder %s1534_s6, %s1167_s9  ;;  %p1170_p2 = scmp.lt.s32.totalorder %s1168_s10, %s1162_s23 }
  0x92   : > { %885 = vmatpush3.bf16.msra.mxu0 %v1027_v5  ;;  %905 = vmatpush3.bf16.msra.mxu1 %v1028_v6  ;;  %v1043_v21 = vld [vmem:[#allocation5 + $0x130] ss:$8 sps:$4 sm:$0xff]   ;;  %v1046_v24 = vld [vmem:[#allocation5 + $0x160] ss:$8 sps:$4 sm:$0xff]   ;;  %p1165_p7 = pneg %p1164_p3 }
  0x93   : > { %886 = vmatprep.subr.bf16.mxu0 %v1246_v0  ;;  %906 = vmatprep.subr.bf16.mxu1 %v1246_v0  ;;  %v1045_v23 = vld [vmem:[#allocation5 + $0x150] ss:$8 sps:$4 sm:$0xff]   ;;  %p1171_p1 = por %p1170_p2, %p1169_p12 }
  0x94   : > { %v1047_v25 = vld [vmem:[#allocation5 + $0x170] ss:$8 sps:$4 sm:$0xff]  }
  0x95   : > { %v847_v54 = vld [vmem:[%s1579_s3] ss:$0 sm:$0xff]  ;;  %p1172_p4 = pnand %p1171_p1, %p1165_p7 }
  0x96   : > { %887 = vmatpush3.bf16.msra.mxu0 %v1029_v7  ;;  %907 = vmatpush3.bf16.msra.mxu1 %v1030_v8 }
  0x97   : > { %888 = vmatprep.subr.bf16.mxu0 %v1246_v0  ;;  %908 = vmatprep.subr.bf16.mxu1 %v1246_v0 }
  0x9a   : > { %889 = vmatpush3.bf16.msra.mxu0 %v1031_v9  ;;  %909 = vmatpush3.bf16.msra.mxu1 %v1032_v10 }
  0x9b   : > { %890 = vmatprep.subr.bf16.mxu0 %v1246_v0  ;;  %910 = vmatprep.subr.bf16.mxu1 %v1246_v0 }
  0x9e   : > { %891 = vmatpush3.bf16.msra.mxu0 %v1033_v11  ;;  %911 = vmatpush3.bf16.msra.mxu1 %v1034_v12 }
  0x9f   : > { %892 = vmatprep.subr.bf16.mxu0 %v1246_v0  ;;  %912 = vmatprep.subr.bf16.mxu1 %v1246_v0 }
  0xa2   : > { %893 = vmatpush3.bf16.msra.mxu0 %v1035_v13  ;;  %913 = vmatpush3.bf16.msra.mxu1 %v1036_v14 }
  0xa3   : > { %894 = vmatprep.subr.bf16.mxu0 %v1246_v0  ;;  %914 = vmatprep.subr.bf16.mxu1 %v1246_v0 }
  0xa6   : > { %895 = vmatpush3.bf16.msra.mxu0 %v1037_v15  ;;  %915 = vmatpush3.bf16.msra.mxu1 %v1039_v16 }
  0xa7   : > { %920 = vmatprep.subr.bf16.mxu0 %v1246_v0 }
  0xa9   : > { %897 = vmatmul.mubr.bf16.vlgmr.msra.gmra.mrb[0].mxu0 %v1038_v17  ;;  %917 = vmatmul.mubr.bf16.vlgmr.msra.gmra.mrb[0].mxu1 %v1038_v17 }
  0xaa   : > { %921 = vmatpush3.bf16.msra.mxu0 %v1040_v18  ;;  %936 = vmatprep.mubr.msk.bf16.mxu0 %vm1247_vm0, %v1246_v0 }
  0xab   : > { %922 = vmatprep.subr.bf16.mxu0 %v1246_v0 }
  0xae   : > { %923 = vmatpush3.bf16.msra.mxu0 %v1041_v19 }
  0xaf   : > { %924 = vmatprep.subr.bf16.mxu0 %v1246_v0 }
  0xb2   : > { %925 = vmatpush3.bf16.msra.mxu0 %v1042_v20 }
  0xb3   : > { %926 = vmatprep.subr.bf16.mxu0 %v1246_v0 }
  0xb6   : > { %927 = vmatpush3.bf16.msra.mxu0 %v1043_v21 }
  0xb7   : > { %928 = vmatprep.subr.bf16.mxu0 %v1246_v0 }
  0xba   : > { %929 = vmatpush3.bf16.msra.mxu0 %v1044_v22 }
  0xbb   : > { %930 = vmatprep.subr.bf16.mxu0 %v1246_v0 }
  0xbe   : > { %931 = vmatpush3.bf16.msra.mxu0 %v1045_v23 }
  0xbf   : > { %932 = vmatprep.subr.bf16.mxu0 %v1246_v0 }
  0xc2   : > { %933 = vmatpush3.bf16.msra.mxu0 %v1046_v24 }
  0xc3   : > { %934 = vmatprep.subr.bf16.mxu0 %v1246_v0 }
  0xc6   : > { %935 = vmatpush3.bf16.msra.mxu0 %v1047_v25 }
  0xc9   : > { %937 = vmatmul.mubr.bf16.vlgmr.msra.gmra.mrb[4].mxu0 %v1038_v17 }
 0x17c   : > { %v424_v29 = vpop.f32.mrb[0].mxu0  ;;  %v530_v32 = vpop.f32.mrb[0].mxu1 }
 0x17d   : > { %v643_v30 = vrot.slane %v424_v29, 7  ;;  %v898_v31 = vpop.f32.mrb[1].mxu0  ;;  %v918_v34 = vpop.f32.mrb[1].mxu1 }
 0x17e   : > { %v427_v33 = vpop.f32.mrb[2].mxu0  ;;  %v533_v37 = vpop.f32.mrb[2].mxu1 }
 0x17f   : > { %v644_v35 = vrot.slane %v427_v33, 7  ;;  %v899_v36 = vpop.f32.mrb[3].mxu0  ;;  %v919_v38 = vpop.f32.mrb[3].mxu1 }
 0x181   : > { %v647_v39 = vsel %vm645_vm1, %v644_v35, %v643_v30  ;;  %v646_v40 = vsel %vm645_vm1, %v643_v30, %v644_v35 }
 0x182   : > { %v652_v41 = vsel %vm314_vm2, %v647_v39, 0.0  ;;  %v655_v42 = vadd.f32 %v646_v40, %v533_v37 }
 0x183   : > { %v654_v43 = vadd.f32 %v652_v41, %v530_v32 }
 0x19c   : > { %v636_v46 = vpop.f32.mrb[4].mxu0 }
 0x19d   : > { %v938_v47 = vpop.f32.mrb[5].mxu0  ;;  %v656_v49 = vrot.slane %v636_v46, 1 }
 0x19e   : > { %v639_v48 = vpop.f32.mrb[6].mxu0 }
 0x19f   : > { %v657_v50 = vrot.slane %v639_v48, 1  ;;  %v939_v51 = vpop.f32.mrb[7].mxu0 }
 0x1a1   : > { %v659_v52 = vsel %vm658_vm3, %v656_v49, %v657_v50  ;;  %v660_v53 = vsel %vm658_vm3, %v657_v50, %v656_v49 }
 0x1a2   : > { %v666_v55 = vsel %vm317_vm4, %v660_v53, 0.0  ;;  %v667_v56 = vadd.f32 %v659_v52, %v654_v43 }
 0x1a3   : > { %v668_v57 = vadd.f32 %v666_v55, %v655_v42 }
 0x1a4   : > { %v674_v58 = vadd.f32 %v847_v54, %v667_v56 }
 0x1a5   : > { %v675_v59 = vadd.f32 %v847_v54, %v668_v57 }
 0x1a6   : > { %v684_v60 = vmul.f32 %v674_v58, %v674_v58 }
 0x1a7   : > { %v676_v61 = vadd.f32 %v675_v59, %v674_v58  ;;  %v685_v62 = vmul.f32 %v675_v59, %v675_v59 }
 0x1a9   : > { %v677_v63 = vrot.slane %v676_v61, 4  ;;  %v686_v0 = vadd.f32 %v685_v62, %v684_v60 }
 0x1ab   : > { %v678_v1 = vadd.f32 %v677_v63, %v676_v61  ;;  %v687_v2 = vrot.slane %v686_v0, 4 }
 0x1ad   : > { %v679_v3 = vrot.slane %v678_v1, 2  ;;  %v688_v4 = vadd.f32 %v687_v2, %v686_v0 }
 0x1af   : > { %v680_v5 = vadd.f32 %v679_v3, %v678_v1  ;;  %v689_v6 = vrot.slane %v688_v4, 2 }
 0x1b1   : > { %v681_v7 = vrot.slane %v680_v5, 1  ;;  %v690_v8 = vadd.f32 %v689_v6, %v688_v4 }
 0x1b3   : > { %v682_v9 = vadd.f32 %v681_v7, %v680_v5  ;;  %v691_v10 = vrot.slane %v690_v8, 1 }
 0x1b5   : > { %683 = vst [vmem:[%s284_s27] sm:$0x1] %v682_v9  ;;  %v692_v11 = vadd.f32 %v691_v10, %v690_v8 }
 0x1b7   : > { %693 = vst [vmem:[%s284_s27 + $0x1] sm:$0x1] %v692_v11 }
 0x1b8   : > { %1175 = shalt.err (!%p1172_p4)
}
 0x1b9   : > { %s1176_s12 = scalar_lea.hbm %s1532_s8, 32  ;;  %s1180_s24 = scalar_lea.hbm %s1581_s5, 64 }
 0x1ba   : > { %p1177_p9 = scmp.ne.s32.totalorder %s1532_s8, %s1176_s12  ;;  %p1181_p8 = scmp.lt.u32.totalorder %s1532_s8, %s1581_s5 }
 0x1bb   : > { %p1182_p13 = scmp.lt.u32.totalorder %s1180_s24, %s1176_s12  ;;  %p1184_p10 = scmp.lt.u32.totalorder %s1176_s12, %s1532_s8 }
 0x1bc   : > { %p1178_p0 = pnand %p1177_p9, %p1424_p5 }
 0x1bd   : > { %p1183_p6 = por %p1182_p13, %p1181_p8 }
 0x1be   : > { %p1179_p11 = pneg %p1178_p0 }
 0x1bf   : > { %p1185_p3 = por %p1184_p10, %p1183_p6 }
 0x1c1   : > { %p1186_p7 = pnand %p1185_p3, %p1179_p11 }
 0x1c3   : > { %1189 = shalt.err (!%p1186_p7)
}
 0x1c4   : > { %954 = dma.vmem_to_hbm [thread:$0]  (%p1424_p5), %s1534_s6, 32, %s1532_s8, %s695_s28  }
 0x1c5 PF: > { %s720_s15 = sand.u32 1, %s1224_s18   ;;  %p1599_p12 = scmp.ne.s32.totalorder %s1586_s25, 0 }
 0x1c6   : > { %p1600_p2 = scmp.ge.s32.totalorder %s1236_s21, 2  ;;  %s721_s27 = scalar_lea.sflag [#allocation4], %s720_s15 }
 0x1c8   : > { %p971_p1 = pnand %p1600_p2, %p1599_p12 }
 0x1ca   : > { %1219 = dma.done.wait (!%p971_p1), %s721_s27, 32  }
 0x1cb   : > { %1221 = vsyncadd (!%p971_p1), %s721_s27, 4294967264  ;;  %p20_p4 = scmp.ge.s32.totalorder %s1392_s30, 4   ;;  %s1601_s18 = smov %s1228_s19 }
 0x1cc   : > { %s1602_s19 = smov %s1232_s20  ;;  %s1603_s20 = smov %s1420_s29 }
 0x1cd   : > { %s1604_s21 = smov %s1392_s30  ;;  %22 = sbr.rel (!%p20_p4) target bundleno = 7 (0x7), region = 99 }
 0x1d4   :  { %726 = vsyncpa [#allocation3], 1 }
 0x1d5   :  { %728 = vsyncpa [#allocation3 + $0x1], 1 }
 0x1d6   :  { %729 = vsyncpa [#allocation6], 1 }
 0x1d7   :  { %730 = vsyncpa [#allocation9], 1 }
 0x1d8   :  { %731 = vsyncpa [#allocation4], 1 }
 0x1d9   :  { %733 = vsyncpa [#allocation4 + $0x1], 1 }

</bundles_post_ra>
